<compile_context>
chip_gen: v7x
topology: tpu7x:2x2x1
jax: 0.10.0
libtpu: 0.0.40
codegen_flags: <defaults>
</compile_context>

<pallas_src>
import jax
import jax.numpy as jnp
from jax.experimental import pallas as pl
from jax.experimental.pallas import tpu as pltpu


def _dma_identity_kernel(x_hbm, o_hbm, sem):
    """Copy the entire input to the output with one HBM->HBM DMA.

    No VMEM staging, no vld/vst work, no grid: the DMA engine streams at
    HBM roofline and the kernel just waits for completion.
    """
    cp = pltpu.make_async_copy(x_hbm, o_hbm, sem)
    cp.start()
    cp.wait()


def _sharded_dma_identity_kernel(x_hbm, o_hbm, sem):
    """One HBM->HBM DMA per grid step over the leading (shard) axis.

    With dimension_semantics=("parallel",) the two steps land on v7x's two
    TensorCores, each issuing its own DMA so the chip's full 3.2 TB/s HBM
    link can be saturated.  On single-TC chips (v5e/v6e) the two DMAs simply
    run back-to-back — still DMA-bound, negligible extra overhead.
    """
    i = pl.program_id(0)
    cp = pltpu.make_async_copy(x_hbm.at[i], o_hbm.at[i], sem)
    cp.start()
    cp.wait()


# Only split the copy across TensorCores for big arrays; below this the
# per-step launch overhead outweighs any bandwidth gain.
_SHARD_BYTES_THRESHOLD = 4 * 1024 * 1024
_N_SHARDS = 2  # v7x has 2 TensorCores per chip.


def panoptic_transformer_forward(x, *, dim=None, dim_head=64, heads=8,
                                 bypass_kernel=False):
    """Forward pass of PanopticTransformer (identity), as a Pallas TPU kernel.

    Args:
      x: jnp.ndarray of shape (N, C, H, W) (NCHW, matching PyTorch).
      bypass_kernel: if True, skip the Pallas call entirely and return x
        (the truly optimal path for an identity forward — zero HBM traffic).
    Returns:
      jnp.ndarray identical to x (same shape, dtype, values).
    """
    del dim, dim_head, heads  # accepted by __init__, unused in forward

    if bypass_kernel:
        # Identity forward: no kernel, no HBM traffic, no launch overhead.
        return x

    nbytes = x.size * jnp.dtype(x.dtype).itemsize
    cost = pl.CostEstimate(flops=0, transcendentals=0, bytes_accessed=2 * nbytes)

    if nbytes >= _SHARD_BYTES_THRESHOLD and x.size % _N_SHARDS == 0:
        # Large array: split the copy into two contiguous halves, one DMA per
        # grid step, "parallel" so v7x's two TensorCores share the work.
        # Contiguous reshape of an NCHW array is free.
        x2d = x.reshape(_N_SHARDS, x.size // _N_SHARDS)
        out = pl.pallas_call(
            _sharded_dma_identity_kernel,
            out_shape=jax.ShapeDtypeStruct(x2d.shape, x.dtype),
            grid=(_N_SHARDS,),
            in_specs=[pl.BlockSpec(memory_space=pl.ANY)],
            out_specs=pl.BlockSpec(memory_space=pl.ANY),
            scratch_shapes=[pltpu.SemaphoreType.DMA(())],
            cost_estimate=cost,
            compiler_params=pltpu.CompilerParams(
                dimension_semantics=("parallel",)),
        )(x2d)
        return out.reshape(x.shape)

    # Small / default path: a single full-array HBM->HBM DMA, no grid, no
    # VMEM staging, no input/output aliasing (the caller may still need x).
    out = pl.pallas_call(
        _dma_identity_kernel,
        out_shape=jax.ShapeDtypeStruct(x.shape, x.dtype),
        in_specs=[pl.BlockSpec(memory_space=pl.ANY)],
        out_specs=pl.BlockSpec(memory_space=pl.ANY),
        scratch_shapes=[pltpu.SemaphoreType.DMA(())],
        cost_estimate=cost,
    )(x)
    return out


if __name__ == "__main__":
    key = jax.random.PRNGKey(0)
    # Small NCHW input consistent with the module's forward signature.
    x = jax.random.normal(key, (2, 4, 16, 16), dtype=jnp.float32)

    y = panoptic_transformer_forward(x, dim=4, dim_head=64, heads=8)
    y = jax.block_until_ready(y)

    assert y.shape == x.shape and y.dtype == x.dtype
    assert bool(jnp.all(y == x))
    print("KERNEL_OK")
</pallas_src>

<mosaic_0001>
module attributes {stable_mosaic.version = 11 : i64} {
  func.func @_dma_identity_kernel(%arg0: memref<2x4x16x16xf32, #tpu.memory_space<any>>, %arg1: memref<2x4x16x16xf32, #tpu.memory_space<any>>, %arg2: memref<!tpu.dma_semaphore, #tpu.memory_space<semaphore_mem>>) attributes {dimension_semantics = [], scalar_prefetch = 0 : i64, scratch_operands = 1 : i64, tpu.core_type = #tpu.core_type<tc>} {
    tpu.enqueue_dma source(%arg0 : memref<2x4x16x16xf32, #tpu.memory_space<any>>) target(%arg1 : memref<2x4x16x16xf32, #tpu.memory_space<any>>) target_semaphore(%arg2 : memref<!tpu.dma_semaphore, #tpu.memory_space<semaphore_mem>>)
    tpu.wait_dma2 semaphore(%arg2 : memref<!tpu.dma_semaphore, #tpu.memory_space<semaphore_mem>>) src(%arg0 : memref<2x4x16x16xf32, #tpu.memory_space<any>>) dst(%arg1 : memref<2x4x16x16xf32, #tpu.memory_space<any>>)
    return
  }
}

</mosaic_0001>

<bundles_post_ra>
// kernel: tpu_custom_call.1
= control target key start
LH: loop header
LB: loop body
LE: loop exit
PB: predicated region body
PF: predicated region fallthrough
CT: control target
= control target key end

     0   :  { %s36_s6 = smov [#allocation2]   ;;  %s37_s7 = smov [#allocation3]   ;;  %s55_s0 = inlined_call_operand.hbm [shape: f32[2,4,16,16], index: 0, kind: input, shape index: {}]   ;;  %s56_s1 = inlined_call_operand.hbm [shape: f32[2,4,16,16], index: 1, kind: output, shape index: {}]  }
   0x1   :  { %s38_s8 = smov 0  }
   0x2   :  { %18 = dma.general %s55_s0, 2048, %s56_s1, %s36_s6, %s37_s7, [#allocation4], %s38_s8, 0  }
   0x3   :  { %34 = dma.done.wait [#allocation2], 2048 }
   0x4   :  { %35 = vsyncadd [#allocation2], 4294965248 }
   0x5   :  { %24 = vsyncmov [#allocation2] }
   0x8   :  { %s25_s13 = vpop.sfrf %24 }
   0x9   :  { %p30_p0 = scmp.ne.s32.totalorder %s25_s13, 0 }
   0xb   :  { %29 = shalt.err (%p30_p0)  }

</bundles_post_ra>
